<compile_context>
chip_gen: v6e
topology: v6e:2x2x1
jax: 0.10.0
libtpu: 0.0.40
codegen_flags: <defaults>
</compile_context>

<pallas_src>
import functools
import math

import jax
import jax.numpy as jnp
from jax.experimental import pallas as pl
from jax.experimental.pallas import tpu as pltpu


def _round_up(x, m):
    return ((x + m - 1) // m) * m


# -----------------------------------------------------------------------------
# Kernel
# -----------------------------------------------------------------------------
def _mdrff_fused_kernel(ncomp, nexp, nexp_pad,
                        x_ref, omega_ref, phase_ref, w_ref, b_ref, out_ref):
    # ---- RFF feature map: one full-width cos (phase trick folds in sin) ----
    x = x_ref[...]                                                  # (TB, D) f32
    proj = jnp.dot(x, omega_ref[...],
                   preferred_element_type=jnp.float32)              # (TB, nfeat)
    z = jnp.cos(proj + phase_ref[...])                              # (TB, nfeat)
    # NOTE: sqrt(2/nfeat) is pre-folded into w_ref.

    # ---- single fused head matmul, bf16 operands, f32 accumulation ----
    h = jnp.dot(z.astype(jnp.bfloat16), w_ref[...],
                preferred_element_type=jnp.float32) + b_ref[...]    # (TB, NPAD)

    # ---- epilogue restricted to the leading lane-aligned exp region ----
    # Column layout of the slab: [pi | L_diag | mu | L | zero-pad].
    # Only the first `nexp` = ncomp + outputd*ncomp columns need exp/softmax,
    # so all transcendental + select work runs on h[:, :nexp_pad]
    # (nexp_pad = round_up(nexp, 128)); the tail is a plain passthrough store.
    head = h[:, :nexp_pad]
    col = jax.lax.broadcasted_iota(jnp.int32, (1, nexp_pad), 1)     # (1, lanes)
    is_pi = col < ncomp
    is_exp = col < nexp

    m = jnp.max(jnp.where(is_pi, head, -jnp.inf), axis=-1, keepdims=True)
    e = jnp.exp(head - jnp.where(is_pi, m, 0.0))
    denom = jnp.sum(jnp.where(is_pi, e, 0.0), axis=-1, keepdims=True)
    inv = pl.reciprocal(denom, approx=True)
    scale = jnp.where(is_pi, inv, 1.0)          # softmax for pi, plain exp for L_diag
    head_out = jnp.where(is_exp, e * scale, head)

    if nexp_pad == out_ref.shape[-1]:
        out_ref[...] = head_out.astype(out_ref.dtype)
    else:
        out_ref[:, :nexp_pad] = head_out.astype(out_ref.dtype)
        out_ref[:, nexp_pad:] = h[:, nexp_pad:].astype(out_ref.dtype)


# -----------------------------------------------------------------------------
# Wrapper
# -----------------------------------------------------------------------------
def mdrff_forward(x, packed, *, ncomp, outputd, block_b=1024, min_grid_steps=2,
                  out_dtype=jnp.bfloat16, return_packed=False):
    """Full MDRFF forward pass: one fused Pallas kernel + glue slices/reshapes.

    If `return_packed=True`, the raw (B, NPAD) slab and the column offsets are
    returned instead, so downstream consumers can index it directly and skip
    the slice/reshape HBM round-trip.
    """
    B, inputd = x.shape
    omega_dup = packed["omega_dup"]           # (inputd, nfeat) f32
    phase = packed["phase"]                   # (1, nfeat)      f32
    w_all = packed["w_all"]                   # (nfeat, NPAD)   bf16 (scale folded)
    b_all = packed["b_all"]                   # (1, NPAD)       f32
    nfeat = omega_dup.shape[1]
    npad = w_all.shape[1]
    n_tril = (outputd * (outputd - 1)) // 2
    nexp = ncomp + outputd * ncomp            # pi + L_diag columns (exp region)
    nexp_pad = min(_round_up(nexp, 128), npad)

    # --- batch tiling: minimize padding waste, cap tile at block_b, and give
    # the v7x second TensorCore >=2 parallel grid steps when the batch allows.
    out_itemsize = jnp.dtype(out_dtype).itemsize
    row_align = 16 if out_itemsize < 4 else 8
    steps = max(pl.cdiv(B, block_b), 1)
    if B >= 2 * row_align:
        steps = max(steps, min_grid_steps)
    tb = _round_up(pl.cdiv(B, steps), row_align)
    steps = pl.cdiv(B, tb)
    b_pad = steps * tb
    if b_pad != B:
        x = jnp.pad(x, ((0, b_pad - B), (0, 0)))

    # --- explicit VMEM budget (matters on v5e's 16 MiB scoped default).
    est = (2 * tb * inputd * 4                                   # x double-buffer
           + 2 * tb * npad * out_itemsize                        # out double-buffer
           + 2 * (inputd * nfeat * 4 + nfeat * 4                 # Omega + phase
                  + nfeat * npad * 2 + npad * 4)                 # W_all + b_all
           + 2 * tb * (nfeat + npad) * 4                         # f32 temporaries
           + (4 << 20))                                          # headroom
    vmem_limit = int(min(max(est, 16 << 20), 64 << 20))

    kernel = functools.partial(_mdrff_fused_kernel, ncomp, nexp, nexp_pad)

    slab = pl.pallas_call(
        kernel,
        out_shape=jax.ShapeDtypeStruct((b_pad, npad), out_dtype),
        grid=(steps,),
        in_specs=[
            pl.BlockSpec((tb, inputd), lambda i: (i, 0)),       # x tile
            pl.BlockSpec((inputd, nfeat), lambda i: (0, 0)),    # Omega_dup (resident)
            pl.BlockSpec((1, nfeat), lambda i: (0, 0)),         # phase     (resident)
            pl.BlockSpec((nfeat, npad), lambda i: (0, 0)),      # fused W   (resident)
            pl.BlockSpec((1, npad), lambda i: (0, 0)),          # fused b   (resident)
        ],
        out_specs=pl.BlockSpec((tb, npad), lambda i: (i, 0)),   # lane-dense bf16 slab
        compiler_params=pltpu.CompilerParams(
            dimension_semantics=("parallel",),
            vmem_limit_bytes=vmem_limit),
    )(x, omega_dup, phase, w_all, b_all)

    if return_packed:
        offsets = dict(
            pi=(0, ncomp),
            L_diag=(ncomp, nexp),
            mu=(nexp, nexp + outputd * ncomp),
            L=(nexp + outputd * ncomp, nexp + outputd * ncomp + n_tril * ncomp))
        return slab[:B], offsets

    # Glue: slice heads out of the bf16 slab (padded rows / pad columns dropped).
    pi = slab[:B, :ncomp]
    L_diag = slab[:B, ncomp:nexp].reshape(B, outputd, ncomp)
    off = nexp
    mu = slab[:B, off:off + outputd * ncomp].reshape(B, outputd, ncomp)
    off += outputd * ncomp
    L = slab[:B, off:off + n_tril * ncomp].reshape(B, n_tril, ncomp)
    return pi, mu, L, L_diag


# -----------------------------------------------------------------------------
# Parameters
# -----------------------------------------------------------------------------
def init_params(key, *, inputd, nfeat, ncomp, outputd, sigma=1.0):
    """Deterministic synthetic parameters (PyTorch nn.Linear-style uniform init),
    stored as (in_features, out_features) so the hot path is z @ W + b."""
    assert nfeat % 2 == 0, "nfeat must be even for [cos, sin] RFF features"
    n_tril = (outputd * (outputd - 1)) // 2
    ks = jax.random.split(key, 9)

    def linear(kw, kb, fan_in, fan_out):
        bound = 1.0 / math.sqrt(fan_in)
        w = jax.random.uniform(kw, (fan_in, fan_out), jnp.float32, -bound, bound)
        b = jax.random.uniform(kb, (1, fan_out), jnp.float32, -bound, bound)
        return w, b

    omega = jax.random.normal(ks[0], (inputd, nfeat // 2), jnp.float32) / sigma
    w_pi, b_pi = linear(ks[1], ks[2], nfeat, ncomp)
    w_L, b_L = linear(ks[3], ks[4], nfeat, n_tril * ncomp)
    w_Ld, b_Ld = linear(ks[5], ks[6], nfeat, outputd * ncomp)
    w_mu, b_mu = linear(ks[7], ks[8], nfeat, outputd * ncomp)

    return dict(omega=omega,
                w_pi=w_pi, b_pi=b_pi,
                w_L=w_L, b_L=b_L,
                w_Ld=w_Ld, b_Ld=b_Ld,
                w_mu=w_mu, b_mu=b_mu)


def pack_params(params, *, nfeat, ncomp, outputd):
    """One-time packing: duplicated Omega + phase row, fused & scaled head
    weights (bf16) padded to a 128-lane-multiple slab, fused biases (f32).
    Column order [pi | L_diag | mu | L | pad] keeps the exp-needing columns
    contiguous in the leading 128-lane group(s)."""
    n_tril = (outputd * (outputd - 1)) // 2
    half = nfeat // 2

    omega = params["omega"]                                     # (inputd, nfeat//2)
    omega_dup = jnp.concatenate([omega, omega], axis=1)         # (inputd, nfeat)
    phase = jnp.concatenate(
        [jnp.zeros((1, half), jnp.float32),
         jnp.full((1, half), -0.5 * math.pi, jnp.float32)], axis=1)

    scale = jnp.float32(math.sqrt(2.0 / nfeat))
    w_all = jnp.concatenate(
        [params["w_pi"], params["w_Ld"], params["w_mu"], params["w_L"]],
        axis=1) * scale                                         # scale folded in
    b_all = jnp.concatenate(
        [params["b_pi"], params["b_Ld"], params["b_mu"], params["b_L"]], axis=1)

    total = ncomp + 2 * outputd * ncomp + n_tril * ncomp
    npad = _round_up(max(total, 1), 128)
    pad = npad - total
    w_all = jnp.pad(w_all, ((0, 0), (0, pad))).astype(jnp.bfloat16)
    b_all = jnp.pad(b_all, ((0, 0), (0, pad)))

    return dict(omega_dup=omega_dup, phase=phase, w_all=w_all, b_all=b_all)


# -----------------------------------------------------------------------------
# Pure-JAX reference (f32 everywhere) for correctness checking
# -----------------------------------------------------------------------------
def mdrff_reference(x, params, *, nfeat, ncomp, outputd):
    scale = math.sqrt(2.0 / nfeat)
    proj = x @ params["omega"]
    z = jnp.concatenate([jnp.cos(proj), jnp.sin(proj)], axis=-1) * scale
    pi = jax.nn.softmax(z @ params["w_pi"] + params["b_pi"], axis=-1)
    mu = (z @ params["w_mu"] + params["b_mu"]).reshape(-1, outputd, ncomp)
    n_tril = (outputd * (outputd - 1)) // 2
    L = (z @ params["w_L"] + params["b_L"]).reshape(-1, n_tril, ncomp)
    Ld = jnp.exp(z @ params["w_Ld"] + params["b_Ld"]).reshape(-1, outputd, ncomp)
    return pi, mu, L, Ld


if __name__ == "__main__":
    # Small shapes consistent with the module's forward:
    #   batch B=8, input dim=4, nfeat=128, ncomp=8 gaussians, outputd=3.
    B, INPUTD, NFEAT, NCOMP, OUTPUTD = 8, 4, 128, 8, 3
    N_TRIL = (OUTPUTD * (OUTPUTD - 1)) // 2

    key = jax.random.PRNGKey(0)
    k_x, k_p = jax.random.split(key)
    x = jax.random.normal(k_x, (B, INPUTD), jnp.float32)
    params = init_params(k_p, inputd=INPUTD, nfeat=NFEAT,
                         ncomp=NCOMP, outputd=OUTPUTD, sigma=1.0)
    packed = pack_params(params, nfeat=NFEAT, ncomp=NCOMP, outputd=OUTPUTD)

    pi, mu, L, L_diag = mdrff_forward(x, packed, ncomp=NCOMP, outputd=OUTPUTD)
    jax.block_until_ready((pi, mu, L, L_diag))

    # Shape / semantics sanity checks.
    assert pi.shape == (B, NCOMP)
    assert mu.shape == (B, OUTPUTD, NCOMP)
    assert L.shape == (B, N_TRIL, NCOMP)
    assert L_diag.shape == (B, OUTPUTD, NCOMP)

    pi32 = pi.astype(jnp.float32)
    mu32 = mu.astype(jnp.float32)
    L32 = L.astype(jnp.float32)
    Ld32 = L_diag.astype(jnp.float32)

    # Approx reciprocal + bf16 output => loose sum-to-one tolerance.
    assert bool(jnp.allclose(jnp.sum(pi32, axis=-1), 1.0, atol=1e-2))
    assert bool(jnp.all(Ld32 > 0.0))

    # Numerical check vs the f32 pure-JAX reference
    # (bf16 head matmul + bf16 output slab => loose tolerance).
    r_pi, r_mu, r_L, r_Ld = mdrff_reference(x, params, nfeat=NFEAT,
                                            ncomp=NCOMP, outputd=OUTPUTD)
    for got, ref in ((pi32, r_pi), (mu32, r_mu), (L32, r_L), (Ld32, r_Ld)):
        assert bool(jnp.max(jnp.abs(got - ref)) < 3e-2)

    print("KERNEL_OK")
</pallas_src>

<mosaic_0001>
module attributes {stable_mosaic.version = 11 : i64} {
  func.func @_mdrff_fused_kernel(%arg0: i32, %arg1: memref<16x4xf32, #tpu.memory_space<vmem>>, %arg2: memref<4x128xf32, #tpu.memory_space<vmem>>, %arg3: memref<1x128xf32, #tpu.memory_space<vmem>>, %arg4: memref<128x128xbf16, #tpu.memory_space<vmem>>, %arg5: memref<1x128xf32, #tpu.memory_space<vmem>>, %arg6: memref<16x128xbf16, #tpu.memory_space<vmem>>) attributes {dimension_semantics = [#tpu.dimension_semantics<parallel>], iteration_bounds = array<i64: 1>, scalar_prefetch = 0 : i64, scratch_operands = 0 : i64, tpu.core_type = #tpu.core_type<tc>, window_params = [{transform_indices = @transform_0, window_bounds = array<i64: 16, 4>}, {pipeline_mode = #tpu.pipeline_mode<synchronous>, transform_indices = @transform_1, window_bounds = array<i64: 4, 128>}, {pipeline_mode = #tpu.pipeline_mode<synchronous>, transform_indices = @transform_2, window_bounds = array<i64: 1, 128>}, {pipeline_mode = #tpu.pipeline_mode<synchronous>, transform_indices = @transform_3, window_bounds = array<i64: 128, 128>}, {pipeline_mode = #tpu.pipeline_mode<synchronous>, transform_indices = @transform_4, window_bounds = array<i64: 1, 128>}, {transform_indices = @transform_5, window_bounds = array<i64: 16, 128>}]} {
    %c0 = arith.constant 0 : index
    %c0_0 = arith.constant 0 : index
    %0 = vector.load %arg1[%c0, %c0_0] : memref<16x4xf32, #tpu.memory_space<vmem>>, vector<16x4xf32>
    %c0_1 = arith.constant 0 : index
    %c0_2 = arith.constant 0 : index
    %1 = vector.load %arg2[%c0_1, %c0_2] : memref<4x128xf32, #tpu.memory_space<vmem>>, vector<4x128xf32>
    %cst = arith.constant dense<0.000000e+00> : vector<16x128xf32>
    %2 = tpu.matmul %0, %1, %cst {dimension_numbers = #tpu.dot_dimension_numbers<[1], [0], [0], [1], [0, 0, 1, 1], [], []>} : vector<16x4xf32>, vector<4x128xf32>, vector<16x128xf32> -> vector<16x128xf32>
    %c0_3 = arith.constant 0 : index
    %c0_4 = arith.constant 0 : index
    %3 = vector.load %arg3[%c0_3, %c0_4] : memref<1x128xf32, #tpu.memory_space<vmem>>, vector<1x128xf32>
    %4 = vector.broadcast %3 : vector<1x128xf32> to vector<16x128xf32>
    %5 = arith.addf %2, %4 : vector<16x128xf32>
    %6 = math.cos %5 : vector<16x128xf32>
    %7 = arith.truncf %6 : vector<16x128xf32> to vector<16x128xbf16>
    %c0_5 = arith.constant 0 : index
    %c0_6 = arith.constant 0 : index
    %8 = vector.load %arg4[%c0_5, %c0_6] : memref<128x128xbf16, #tpu.memory_space<vmem>>, vector<128x128xbf16>
    %cst_7 = arith.constant dense<0.000000e+00> : vector<16x128xf32>
    %9 = tpu.matmul %7, %8, %cst_7 {dimension_numbers = #tpu.dot_dimension_numbers<[1], [0], [0], [1], [0, 0, 1, 1], [], []>} : vector<16x128xbf16>, vector<128x128xbf16>, vector<16x128xf32> -> vector<16x128xf32>
    %c0_8 = arith.constant 0 : index
    %c0_9 = arith.constant 0 : index
    %10 = vector.load %arg5[%c0_8, %c0_9] : memref<1x128xf32, #tpu.memory_space<vmem>>, vector<1x128xf32>
    %11 = vector.broadcast %10 : vector<1x128xf32> to vector<16x128xf32>
    %12 = arith.addf %9, %11 : vector<16x128xf32>
    %13 = tpu.iota {dimensions = array<i32: 1>} : vector<1x128xi32>
    %c8_i32 = arith.constant 8 : i32
    %14 = vector.broadcast %c8_i32 : i32 to vector<1x128xi32>
    %15 = arith.cmpi slt, %13, %14 : vector<1x128xi32>
    %c32_i32 = arith.constant 32 : i32
    %16 = vector.broadcast %c32_i32 : i32 to vector<1x128xi32>
    %17 = arith.cmpi slt, %13, %16 : vector<1x128xi32>
    %cst_10 = arith.constant 0xFF800000 : f32
    %18 = vector.shape_cast %15 : vector<1x128xi1> to vector<1x128xi1>
    %19 = vector.broadcast %18 : vector<1x128xi1> to vector<16x128xi1>
    %20 = vector.broadcast %cst_10 : f32 to vector<16x128xf32>
    %21 = arith.select %19, %12, %20 : vector<16x128xi1>, vector<16x128xf32>
    %cst_11 = arith.constant dense<0xFF800000> : vector<16xf32>
    %22 = vector.multi_reduction <maximumf>, %21, %cst_11 [1] : vector<16x128xf32> to vector<16xf32>
    %23 = vector.shape_cast %22 : vector<16xf32> to vector<16x1xf32>
    %cst_12 = arith.constant 0.000000e+00 : f32
    %24 = vector.shape_cast %15 : vector<1x128xi1> to vector<1x128xi1>
    %25 = vector.broadcast %24 : vector<1x128xi1> to vector<16x128xi1>
    %26 = vector.shape_cast %23 : vector<16x1xf32> to vector<16x1xf32>
    %27 = vector.broadcast %26 : vector<16x1xf32> to vector<16x128xf32>
    %28 = vector.broadcast %cst_12 : f32 to vector<16x128xf32>
    %29 = arith.select %25, %27, %28 : vector<16x128xi1>, vector<16x128xf32>
    %30 = arith.subf %12, %29 : vector<16x128xf32>
    %31 = math.exp %30 : vector<16x128xf32>
    %cst_13 = arith.constant 0.000000e+00 : f32
    %32 = vector.shape_cast %15 : vector<1x128xi1> to vector<1x128xi1>
    %33 = vector.broadcast %32 : vector<1x128xi1> to vector<16x128xi1>
    %34 = vector.broadcast %cst_13 : f32 to vector<16x128xf32>
    %35 = arith.select %33, %31, %34 : vector<16x128xi1>, vector<16x128xf32>
    %cst_14 = arith.constant dense<0.000000e+00> : vector<16xf32>
    %36 = vector.multi_reduction <add>, %35, %cst_14 [1] : vector<16x128xf32> to vector<16xf32>
    %37 = vector.shape_cast %36 : vector<16xf32> to vector<16x1xf32>
    %38 = tpu.reciprocal %37 {approx = true} : vector<16x1xf32> -> vector<16x1xf32>
    %cst_15 = arith.constant 1.000000e+00 : f32
    %39 = vector.shape_cast %15 : vector<1x128xi1> to vector<1x128xi1>
    %40 = vector.broadcast %39 : vector<1x128xi1> to vector<16x128xi1>
    %41 = vector.shape_cast %38 : vector<16x1xf32> to vector<16x1xf32>
    %42 = vector.broadcast %41 : vector<16x1xf32> to vector<16x128xf32>
    %43 = vector.broadcast %cst_15 : f32 to vector<16x128xf32>
    %44 = arith.select %40, %42, %43 : vector<16x128xi1>, vector<16x128xf32>
    %45 = arith.mulf %31, %44 : vector<16x128xf32>
    %46 = vector.shape_cast %17 : vector<1x128xi1> to vector<1x128xi1>
    %47 = vector.broadcast %46 : vector<1x128xi1> to vector<16x128xi1>
    %48 = arith.select %47, %45, %12 : vector<16x128xi1>, vector<16x128xf32>
    %49 = arith.truncf %48 : vector<16x128xf32> to vector<16x128xbf16>
    %c0_16 = arith.constant 0 : index
    %c0_17 = arith.constant 0 : index
    %50 = vector.load %arg6[%c0_16, %c0_17] : memref<16x128xbf16, #tpu.memory_space<vmem>>, vector<16x128xbf16>
    tpu.vector_store %arg6[%c0_16, %c0_17], %49 {strides = array<i32>} : memref<16x128xbf16, #tpu.memory_space<vmem>>, vector<16x128xbf16>,
    return
  }
  func.func @transform_0(%arg0: i32) -> (i32, i32) {
    %c0_i32 = arith.constant 0 : i32
    %c0_i32_0 = arith.constant 0 : i32
    return %arg0, %c0_i32 : i32, i32
  }
  func.func @transform_1(%arg0: i32) -> (i32, i32) {
    %c0_i32 = arith.constant 0 : i32
    %c0_i32_0 = arith.constant 0 : i32
    %c0_i32_1 = arith.constant 0 : i32
    return %c0_i32, %c0_i32_0 : i32, i32
  }
  func.func @transform_2(%arg0: i32) -> (i32, i32) {
    %c0_i32 = arith.constant 0 : i32
    %c0_i32_0 = arith.constant 0 : i32
    %c0_i32_1 = arith.constant 0 : i32
    return %c0_i32, %c0_i32_0 : i32, i32
  }
  func.func @transform_3(%arg0: i32) -> (i32, i32) {
    %c0_i32 = arith.constant 0 : i32
    %c0_i32_0 = arith.constant 0 : i32
    %c0_i32_1 = arith.constant 0 : i32
    return %c0_i32, %c0_i32_0 : i32, i32
  }
  func.func @transform_4(%arg0: i32) -> (i32, i32) {
    %c0_i32 = arith.constant 0 : i32
    %c0_i32_0 = arith.constant 0 : i32
    %c0_i32_1 = arith.constant 0 : i32
    return %c0_i32, %c0_i32_0 : i32, i32
  }
  func.func @transform_5(%arg0: i32) -> (i32, i32) {
    %c0_i32 = arith.constant 0 : i32
    %c0_i32_0 = arith.constant 0 : i32
    return %arg0, %c0_i32 : i32, i32
  }
}

</mosaic_0001>

<bundles_post_ra>
// kernel: tpu_custom_call.1
= control target key start
LH: loop header
LB: loop body
LE: loop exit
PB: predicated region body
PF: predicated region fallthrough
CT: control target
= control target key end

     0   :  { %10 = vsyncpa [#allocation3], 0  ;;  %s832_s0 = inlined_call_operand.vmem [shape: f32[16,4], index: 0, kind: input, shape index: {}]   ;;  %s833_s1 = inlined_call_operand.vmem [shape: f32[4,128], index: 1, kind: input, shape index: {}]   ;;  %s834_s2 = inlined_call_operand.vmem [shape: f32[1,128], index: 2, kind: input, shape index: {}]   ;;  %s835_s3 = inlined_call_operand.hbm [shape: bf16[128,128], index: 3, kind: input, shape index: {}]   ;;  %s836_s4 = inlined_call_operand.vmem [shape: f32[1,128], index: 4, kind: input, shape index: {}]   ;;  %s837_s5 = inlined_call_operand.hbm [shape: bf16[16,128], index: 5, kind: output, shape index: {}]  }
   0x1   :  { %11 = vsyncpa [#allocation4], 0  ;;  %s669_s18 = smov [#allocation2]  }
   0x2   :  { %s23_s19 = sshll.u32 %s669_s18, 4  ;;  %s24_s19 = int_to_ptr.vmem [resolvable:$true] %s23_s19 }
   0x3   :  { %s633_s20 = scalar_lea.vmem %s24_s19, 1024  ;;  %p638_p1 = scmp.lt.s32.totalorder %s24_s19, %s24_s19 }
   0x4   :  { %p634_p0 = scmp.ne.s32.totalorder %s24_s19, %s633_s20  ;;  %p639_p2 = scmp.lt.s32.totalorder %s633_s20, %s633_s20 }
   0x6   :  { %p640_p3 = por %p639_p2, %p638_p1 }
   0x8   :  { %p641_p4 = pnand %p640_p3, %p634_p0 }
   0xa   :  { %644 = shalt.err (!%p641_p4)
}
   0xb   :  { %s670_s21 = smov 64   ;;  %s671_s22 = smov 4  }
   0xc   :  { %29 = dma.hbm_to_vmem [thread:$0]  %s835_s3, 1024, %s24_s19, [#allocation3], %s670_s21, %s670_s21, %s671_s22  }
   0xd   :  { %665 = dma.done.wait [#allocation3], 1024  }
   0xe   :  { %666 = vsyncadd [#allocation3], 4294966272  ;;  %vm53_vm0 = vcmask 1043456   ;;  %vm46_vm1 = vcmask 31744   ;;  %v38_v0 = vld [vmem:[%s833_s1] sm:$0xf] }
   0xf   :  { %v36_v1 = vld [vmem:[%s832_s0] sm:$0xff]  ;;  %v37_v2 = vld [vmem:[%s832_s0 + $0x8] sm:$0xff]  ;;  %556 = vmatprep.subr.msk.mxu0 %vm53_vm0, %v38_v0  ;;  %v601_v3 = vld [vmem:[#allocation2 + $0x38] sm:$0xff]   ;;  %v672_v4 = vmov 0.0   ;;  %vm673_vm2 = vmmov 0  }
  0x10   :  { %558 = vmatprep.mubr.msk.f32.mxu0 %vm46_vm1, %v36_v1  ;;  %557 = vmatpush3.msk.msra.mxu0 %vm53_vm0, %v38_v0  ;;  %v602_v5 = vld [vmem:[#allocation2 + $0x30] sm:$0xff]   ;;  %v603_v6 = vld [vmem:[#allocation2 + $0x28] sm:$0xff]   ;;  %v604_v7 = vld [vmem:[#allocation2 + $0x20] sm:$0xff]   ;;  %v674_v35 = vmov 683565275  }
  0x11   :  { %559 = vmatmul.mubr.msk.f32.vlgmr.msra.gmra.mxu0 %vm46_vm1, %v37_v2  ;;  %561 = vmatprep.subr.bf16.mxu1 %v672_v4  ;;  %v605_v8 = vld [vmem:[#allocation2 + $0x18] sm:$0xff]   ;;  %v606_v9 = vld [vmem:[#allocation2 + $0x10] sm:$0xff]   ;;  %v607_v10 = vld [vmem:[#allocation2 + $0x8] sm:$0xff]   ;;  %v675_v38 = vmov 2475754826  }
  0x12   :  { %562 = vmatpush3.bf16.msra.mxu1 %v601_v3  ;;  %577 = vmatprep.mubr.msk.bf16.mxu1 %vm673_vm2, %v672_v4  ;;  %v608_v11 = vld [vmem:[#allocation2] sm:$0xff]   ;;  %v676_v40 = vmov 2131351028   ;;  %v677_v42 = vmov 2102212464  }
  0x13   :  { %563 = vmatprep.subr.bf16.mxu1 %v672_v4  ;;  %v514_v12 = vld [vmem:[%s834_s2] ss:$0 sm:$0xff]  ;;  %v678_v44 = vmov 920167782   ;;  %v679_v51 = vmov 1326507024  }
  0x16   :  { %564 = vmatpush3.bf16.msra.mxu1 %v602_v5 }
  0x17   :  { %565 = vmatprep.subr.bf16.mxu1 %v672_v4 }
  0x1a   :  { %566 = vmatpush3.bf16.msra.mxu1 %v603_v6 }
  0x1b   :  { %567 = vmatprep.subr.bf16.mxu1 %v672_v4 }
  0x1e   :  { %568 = vmatpush3.bf16.msra.mxu1 %v604_v7 }
  0x1f   :  { %569 = vmatprep.subr.bf16.mxu1 %v672_v4 }
  0x22   :  { %570 = vmatpush3.bf16.msra.mxu1 %v605_v8 }
  0x23   :  { %571 = vmatprep.subr.bf16.mxu1 %v672_v4 }
  0x26   :  { %572 = vmatpush3.bf16.msra.mxu1 %v606_v9 }
  0x27   :  { %573 = vmatprep.subr.bf16.mxu1 %v672_v4 }
  0x2a   :  { %574 = vmatpush3.bf16.msra.mxu1 %v607_v10 }
  0x2b   :  { %575 = vmatprep.subr.bf16.mxu1 %v672_v4 }
  0x2e   :  { %576 = vmatpush3.bf16.msra.mxu1 %v608_v11 }
  0xd1   :  { %v560_v13 = vpop.f32.mrf.mxu0 }
  0xd2   :  { %v729_v14 = vadd.f32 %v560_v13, %v514_v12 }
  0xd3   :  { %v123_v15 = vpop.f32.mrf.mxu0 }
  0xd4   :  { %v235_v16 = vand.u32 2147483647, %v729_v14  ;;  %v238_v17 = vand.u32 2139095040, %v729_v14  ;;  %v733_v18 = vadd.f32 %v514_v12, %v123_v15  ;;  %vm237_vm1 = vcmp.lt.s32.totalorder %v729_v14, 0 }
  0xd6   :  { %v239_v19 = vshrl.u32 %v238_v17, 23  ;;  %v242_v20 = vand.u32 8388607, %v235_v16  ;;  %v135_v21 = vand.u32 2139095040, %v733_v18  ;;  %v132_v23 = vand.u32 2147483647, %v733_v18 }
  0xd7   :  { %vm786_vm2 = vcmp.le.f32.partialorder %v235_v16, 0.7853982 }
  0xd8   :  { %v522_v22 = vadd.s32 4294967169, %v239_v19  ;;  %v136_v24 = vshrl.u32 %v135_v21, 23  ;;  %v243_v26 = vor.u32 8388608, %v242_v20  ;;  %v139_v28 = vand.u32 8388607, %v132_v23 }
  0xda   :  { %v245_v25 = vadd.s32 1, %v522_v22  ;;  %v518_v27 = vadd.s32 4294967169, %v136_v24  ;;  %v741_v33 = vshll.u32 %v243_v26, 8  ;;  %v140_v37 = vor.u32 8388608, %v139_v28 }
  0xdc   :  { %vm246_vm3 = vcmp.gt.s32.totalorder %v245_v25, 0  ;;  %v142_v30 = vadd.s32 1, %v518_v27  ;;  %v180_v6 = vshll.u32 %v140_v37, 8 }
  0xdd   :  { %v247_v29 = vsel %vm246_vm3, %v245_v25, 0  ;;  %vm134_vm3 = vcmp.lt.s32.totalorder %v733_v18, 0 }
  0xde   :  { %v248_v31 = vshrl.u32 %v247_v29, 5  ;;  %v249_v32 = vand.u32 31, %v247_v29  ;;  %vm143_vm4 = vcmp.gt.s32.totalorder %v142_v30, 0 }
  0xdf   :  { %v144_v56 = vsel %vm143_vm4, %v142_v30, 0  ;;  %vm798_vm4 = vcmp.le.f32.partialorder %v132_v23, 0.7853982 }
  0xe0   :  { %v250_v34 = vsub.s32 32, %v249_v32  ;;  %v252_v36 = vshll.u32 %v674_v35, %v249_v32  ;;  %v255_v39 = vshll.u32 %v675_v38, %v249_v32  ;;  %v258_v41 = vshll.u32 %v676_v40, %v249_v32 }
  0xe1   :  { %v261_v43 = vshll.u32 %v677_v42, %v249_v32  ;;  %v264_v45 = vshll.u32 %v678_v44, %v249_v32  ;;  %vm267_vm5 = vcmp.lt.s32.totalorder %v248_v31, 1  ;;  %vm269_vm6 = vcmp.lt.s32.totalorder %v248_v31, 3 }
  0xe2   :  { %v253_v46 = vshrl.u32 %v675_v38, %v250_v34  ;;  %v256_v47 = vshrl.u32 %v676_v40, %v250_v34  ;;  %v259_v48 = vshrl.u32 %v677_v42, %v250_v34  ;;  %v251_v49 = vshrl.u32 %v674_v35, %v250_v34 }
  0xe3   :  { %v262_v50 = vshrl.u32 %v678_v44, %v250_v34  ;;  %v265_v52 = vshrl.u32 %v679_v51, %v250_v34  ;;  %vm270_vm7 = vcmp.lt.s32.totalorder %v248_v31, 4  ;;  %v146_v59 = vand.u32 31, %v144_v56 }
  0xe4   :  { %v254_v53 = vor.u32 %v253_v46, %v252_v36  ;;  %v257_v54 = vor.u32 %v256_v47, %v255_v39  ;;  %v260_v55 = vor.u32 %v259_v48, %v258_v41  ;;  %vm268_vm8 = vcmp.lt.s32.totalorder %v248_v31, 2 }
  0xe5   :  { %v263_v57 = vor.u32 %v262_v50, %v261_v43  ;;  %v266_v58 = vor.u32 %v265_v52, %v264_v45  ;;  %v147_v3 = vsub.s32 32, %v146_v59  ;;  %v145_v10 = vshrl.u32 %v144_v56, 5 }
  0xe6   :  { %v271_v60 = vsel %vm267_vm5, %v251_v49, %v254_v53  ;;  %v272_v61 = vsel %vm270_vm7, %v260_v55, 2102212464  ;;  %v275_v62 = vsel %vm267_vm5, %v254_v53, %v257_v54  ;;  %v279_v63 = vsel %vm267_vm5, %v257_v54, %v260_v55 }
  0xe7   :  { %v273_v0 = vsel %vm269_vm6, %v257_v54, %v272_v61  ;;  %v276_v1 = vsel %vm270_vm7, %v263_v57, 920167782  ;;  %v280_v2 = vsel %vm270_vm7, %v266_v58, 1326507024  ;;  %v149_v17 = vshll.u32 %v674_v35, %v146_v59 }
  0xe8   :  { %v277_v4 = vsel %vm269_vm6, %v260_v55, %v276_v1  ;;  %v281_v5 = vsel %vm269_vm6, %v263_v57, %v280_v2  ;;  %v274_v7 = vsel %vm268_vm8, %v271_v60, %v273_v0  ;;  %v150_v19 = vshrl.u32 %v675_v38, %v147_v3 }
  0xe9   :  { %v278_v8 = vsel %vm268_vm8, %v275_v62, %v277_v4  ;;  %v282_v9 = vsel %vm268_vm8, %v279_v63, %v281_v5  ;;  %v152_v20 = vshll.u32 %v675_v38, %v146_v59  ;;  %v153_v21 = vshrl.u32 %v676_v40, %v147_v3 }
  0xea   :  { %v753_v11 = vmul.u32.u64.low %v741_v33, %v282_v9  ;;  %v754_v12 = vmul.u32.u64.high %v741_v33, %v282_v9, %v753_v11  ;;  %v757_v13 = vmul.u32.u64.low %v741_v33, %v278_v8  ;;  %v758_v15 = vmul.u32.u64.high %v741_v33, %v278_v8, %v757_v13 }
  0xeb   :  { %v155_v22 = vshll.u32 %v676_v40, %v146_v59  ;;  %v156_v24 = vshrl.u32 %v677_v42, %v147_v3  ;;  %v158_v25 = vshll.u32 %v677_v42, %v146_v59  ;;  %v159_v26 = vshrl.u32 %v678_v44, %v147_v3 }
  0xec   :  { %v151_v27 = vor.u32 %v150_v19, %v149_v17  ;;  %v154_v28 = vor.u32 %v153_v21, %v152_v20  ;;  %v161_v29 = vshll.u32 %v678_v44, %v146_v59  ;;  %v162_v30 = vshrl.u32 %v679_v51, %v147_v3 }
  0xed   :  { %v290_v31 = vmul.u32 %v741_v33, %v274_v7  ;;  %vm292_vm9 = vc.u32 %v754_v12, %v757_v13  ;;  %v293_v32 = vadd.s32 1, %v758_v15  ;;  %v157_v34 = vor.u32 %v156_v24, %v155_v22 }
  0xee   :  { %v148_v36 = vshrl.u32 %v674_v35, %v147_v3  ;;  %v160_v37 = vor.u32 %v159_v26, %v158_v25  ;;  %v163_v38 = vor.u32 %v162_v30, %v161_v29  ;;  %vm164_vm10 = vcmp.lt.s32.totalorder %v145_v10, 1 }
  0xef   :  { %v294_v39 = vsel %vm292_vm9, %v293_v32, %v758_v15  ;;  %vm166_vm11 = vcmp.lt.s32.totalorder %v145_v10, 3  ;;  %vm167_vm12 = vcmp.lt.s32.totalorder %v145_v10, 4  ;;  %v172_v40 = vsel %vm164_vm10, %v151_v27, %v154_v28 }
  0xf0   :  { %v295_v41 = vadd.s32 %v294_v39, %v290_v31  ;;  %v169_v42 = vsel %vm167_vm12, %v157_v34, 2102212464  ;;  %v173_v43 = vsel %vm167_vm12, %v160_v37, 920167782  ;;  %v176_v33 = vsel %vm164_vm10, %v154_v28, %v157_v34 }
  0xf1   :  { %vm165_vm13 = vcmp.lt.s32.totalorder %v145_v10, 2  ;;  %v168_v44 = vsel %vm164_vm10, %v148_v36, %v151_v27  ;;  %v174_v45 = vsel %vm166_vm11, %v157_v34, %v173_v43  ;;  %v177_v46 = vsel %vm167_vm12, %v163_v38, 1326507024 }
  0xf2   :  { %v296_v47 = vadd.s32 536870912, %v295_v41  ;;  %v170_v48 = vsel %vm166_vm11, %v154_v28, %v169_v42  ;;  %v175_v49 = vsel %vm165_vm13, %v172_v40, %v174_v45  ;;  %v178_v35 = vsel %vm166_vm11, %v160_v37, %v177_v46 }
  0xf3   :  { %v179_v50 = vsel %vm165_vm13, %v176_v33, %v178_v35  ;;  %v768_v51 = vmul.u32.u64.low %v180_v6, %v175_v49  ;;  %v769_v52 = vmul.u32.u64.high %v180_v6, %v175_v49, %v768_v51  ;;  %v171_v56 = vsel %vm165_vm13, %v168_v44, %v170_v48 }
  0xf4   :  { %v771_v53 = vshrl.u32 %v296_v47, 30  ;;  %v773_v54 = vmul.u32.u64.low %v180_v6, %v179_v50  ;;  %v774_v55 = vmul.u32.u64.high %v180_v6, %v179_v50, %v773_v54  ;;  %v187_v60 = vmul.u32 %v180_v6, %v171_v56 }
  0xf5   :  { %v190_v58 = vadd.s32 1, %v769_v52  ;;  %v291_v9 = vadd.s32 %v757_v13, %v754_v12  ;;  %vm224_vm11 = vweird.f32 %v733_v18  ;;  %vm327_vm12 = vweird.f32 %v729_v14 }
  0xf6   :  { %v298_v57 = vshll.u32 %v771_v53, 30  ;;  %vm189_vm14 = vc.u32 %v774_v55, %v768_v51  ;;  %v188_v31 = vadd.s32 %v768_v51, %v774_v55  ;;  %v321_v48 = vsub.s32 4, %v771_v53 }
  0xf7   :  { %v191_v61 = vsel %vm189_vm14, %v190_v58, %v769_v52 }
  0xf8   :  { %v299_v59 = vsub.s32 %v295_v41, %v298_v57  ;;  %v192_v63 = vadd.s32 %v191_v61, %v187_v60  ;;  %v322_v50 = vsel %vm237_vm1, %v321_v48, %v771_v53 }
  0xf9   :  { %v324_v23 = vsel %vm786_vm2, 0, %v322_v50 }
  0xfa   :  { %v301_v62 = vsub.s32 0, %v299_v59  ;;  %v193_v1 = vadd.s32 536870912, %v192_v63  ;;  %v328_v56 = vand.u32 3, %v324_v23 }
  0xfc   :  { %v523_v0 = vmin.u32 %v301_v62, %v299_v59  ;;  %v194_v3 = vshrl.u32 %v193_v1, 30  ;;  %vm330_vm5 = vcmp.eq.s32.totalorder %v328_v56, 0  ;;  %vm333_vm6 = vcmp.eq.s32.totalorder %v328_v56, 2 }
  0xfd   :  { %vm329_vm8 = vcmp.lt.s32.totalorder %v328_v56, 2 }
  0xfe   :  { %v303_v2 = vclz %v523_v0  ;;  %v195_v5 = vshll.u32 %v194_v3, 30  ;;  %v218_v35 = vsub.s32 4, %v194_v3 }
 0x100   :  { %v524_v4 = vadd.s32 4294967294, %v303_v2  ;;  %v196_v7 = vsub.s32 %v192_v63, %v195_v5  ;;  %v219_v52 = vsel %vm134_vm3, %v218_v35, %v194_v3 }
 0x101   :  { %v221_v55 = vsel %vm798_vm4, 0, %v219_v52 }
 0x102   :  { %vm525_vm15 = vcmp.lt.s32.totalorder %v524_v4, 0  ;;  %v198_v11 = vsub.s32 0, %v196_v7 }
 0x103   :  { %v306_v8 = vsel %vm525_vm15, 0, %v524_v4 }
 0x104   :  { %v307_v10 = vsub.s32 32, %v306_v8  ;;  %v311_v6 = vsub.s32 4294967266, %v306_v8  ;;  %v308_v15 = vshll.u32 %v299_v59, %v306_v8  ;;  %v519_v20 = vmin.u32 %v198_v11, %v196_v7 }
 0x105   :  { %v225_v59 = vand.u32 3, %v221_v55 }
 0x106   :  { %v309_v17 = vshrl.u32 %v291_v9, %v307_v10  ;;  %v312_v19 = vadd.s32 127, %v311_v6  ;;  %v200_v24 = vclz %v519_v20  ;;  %v451_v9 = vlaneseq  ;;  %v526_v6 = vld [vmem:[%s836_s4] ss:$0 sm:$0xff]  ;;  %s680_s4 = smov [#allocation5]  }
 0x107   :  { %vm230_vm7 = vcmp.eq.s32.totalorder %v225_v59, 2  ;;  %vm227_vm9 = vcmp.eq.s32.totalorder %v225_v59, 0  ;;  %vm226_vm10 = vcmp.lt.s32.totalorder %v225_v59, 2  ;;  %s502_s6 = sshll.u32 %s680_s4, 4  ;;  %s503_s6 = int_to_ptr.vmem [resolvable:$true] %s502_s6 }
 0x108   :  { %v310_v21 = vor.u32 %v309_v17, %v308_v15  ;;  %v313_v22 = vshll.u32 %v312_v19, 23  ;;  %v520_v26 = vadd.s32 4294967294, %v200_v24  ;;  %v452_v10 = vand.u32 127, %v451_v9  ;;  %s645_s7 = scalar_lea.vmem %s503_s6, 128  ;;  %p650_p6 = scmp.lt.s32.totalorder %s503_s6, %s503_s6 }
 0x109   :  { %p646_p5 = scmp.ne.s32.totalorder %s503_s6, %s645_s7  ;;  %p651_p7 = scmp.lt.s32.totalorder %s645_s7, %s645_s7 }
 0x10a   :  { %v314_v25 = vor.u32 4788187, %v313_v22  ;;  %v317_v28 = vcvt.s32.f32 %v310_v21  ;;  %vm521_vm0 = vcmp.lt.s32.totalorder %v520_v26, 0  ;;  %vm453_vm13 = vcmp.lt.s32.totalorder %v452_v10, 8 }
 0x10b   :  { %v203_v29 = vsel %vm521_vm0, 0, %v520_v26  ;;  %vm454_vm14 = vcmp.lt.s32.totalorder %v452_v10, 32  ;;  %p652_p8 = por %p651_p7, %p650_p6 }
 0x10c   :  { %v315_v27 = vand.u32 2147483647, %v314_v25  ;;  %v204_v12 = vsub.s32 32, %v203_v29  ;;  %v208_v13 = vsub.s32 4294967266, %v203_v29  ;;  %v205_v34 = vshll.u32 %v196_v7, %v203_v29 }
 0x10d   :  { %p653_p9 = pnand %p652_p8, %p646_p5 }
 0x10e   :  { %v318_v30 = vmul.f32 %v317_v28, %v315_v27  ;;  %v206_v36 = vshrl.u32 %v188_v31, %v204_v12  ;;  %v209_v37 = vadd.s32 127, %v208_v13 }
 0x110   :  { %v319_v32 = vxor.u32 2147483648, %v318_v30  ;;  %v207_v40 = vor.u32 %v206_v36, %v205_v34  ;;  %v210_v41 = vshll.u32 %v209_v37, 23 }
 0x112   :  { %v320_v39 = vsel %vm237_vm1, %v319_v32, %v318_v30  ;;  %v211_v43 = vor.u32 4788187, %v210_v41  ;;  %v214_v44 = vcvt.s32.f32 %v207_v40 }
 0x113   :  { %v323_v42 = vsel %vm786_vm2, %v729_v14, %v320_v39 }
 0x114   :  { %609 = vcosq.f32 %v323_v42  ;;  %v212_v33 = vand.u32 2147483647, %v211_v43 }
 0x115   :  { %611 = vsinq.f32 %v323_v42 }
 0x116   :  { %v215_v45 = vmul.f32 %v214_v44, %v212_v33 }
 0x118   :  { %v216_v46 = vxor.u32 2147483648, %v215_v45 }
 0x11a   :  { %v217_v47 = vsel %vm134_vm3, %v216_v46, %v215_v45 }
 0x11b   :  { %v220_v49 = vsel %vm798_vm4, %v733_v18, %v217_v47 }
 0x11c   :  { %613 = vcosq.f32 %v220_v49 }
 0x11d   :  { %615 = vsinq.f32 %v220_v49 }
 0x121   :  { %v610_v51 = vpop.eup %609 }
 0x122   :  { %v612_v54 = vpop.eup %611  ;;  %v334_v58 = vxor.u32 2147483648, %v610_v51 }
 0x123   :  { %v331_v57 = vxor.u32 2147483648, %v612_v54 }
 0x124   :  { %v335_v62 = vsel %vm333_vm6, %v334_v58, %v612_v54 }
 0x125   :  { %v332_v61 = vsel %vm330_vm5, %v610_v51, %v331_v57 }
 0x126   :  { %v336_v2 = vsel %vm329_vm8, %v332_v61, %v335_v62 }
 0x127   :  { %v337_v7 = vsel %vm327_vm12, nan, %v336_v2 }
 0x129   :  { %v614_v60 = vpop.eup %613 }
 0x12a   :  { %v616_v63 = vpop.eup %615  ;;  %v231_v53 = vxor.u32 2147483648, %v614_v60 }
 0x12b   :  { %v228_v0 = vxor.u32 2147483648, %v616_v63 }
 0x12c   :  { %v232_v1 = vsel %vm230_vm7, %v231_v53, %v616_v63 }
 0x12d   :  { %v229_v3 = vsel %vm227_vm9, %v614_v60, %v228_v0 }
 0x12e   :  { %v233_v4 = vsel %vm226_vm10, %v229_v3, %v232_v1 }
 0x12f   :  { %v234_v5 = vsel %vm224_vm11, nan, %v233_v4 }
 0x130   :  { %v338_v8 = vpack.c.bf16 %v337_v7, %v234_v5 }
 0x132   :  { %578 = vmatmul.mubr.bf16.vlgmr.msra.gmra.mxu1 %v338_v8 }
 0x1f2   :  { %v444_v11 = vpop.f32.mrf.mxu1 }
 0x1f3   :  { %v445_v15 = vadd.f32 %v526_v6, %v444_v11 }
 0x1f4   :  { %v579_v17 = vpop.f32.mrf.mxu1 }
 0x1f5   :  { %v457_v19 = vsel %vm453_vm13, %v445_v15, -inf }
 0x1f6   :  { %459 = vmax.xlane.f32.xlu0 %v457_v19  ;;  %v447_v18 = vpop.f32.mrf.mxu1 }
 0x1f7   :  { %v448_v20 = vadd.f32 %v526_v6, %v447_v18 }
 0x1f8   :  { %v580_v14 = vpop.f32.mrf.mxu1 }
 0x1f9   :  { %v458_v21 = vsel %vm453_vm13, %v448_v20, -inf }
 0x1fa   :  { %461 = vmax.xlane.f32.xlu0 %v458_v21 }
 0x27f   :  { %v460_v22 = vpop.xlane.xlu0 %459 }
 0x280   :  { %v463_v24 = vsel %vm453_vm13, %v460_v22, 0.0 }
 0x281   :  { %v465_v25 = vsub.f32 %v445_v15, %v463_v24 }
 0x283   :  { %v467_v26 = vmul.f32 1.442695, %v465_v25  ;;  %v462_v27 = vpop.xlane.xlu0 %461 }
 0x284   :  { %v464_v28 = vsel %vm453_vm13, %v462_v27, 0.0 }
 0x285   :  { %617 = vpow2.f32 %v467_v26  ;;  %v466_v29 = vsub.f32 %v448_v20, %v464_v28 }
 0x287   :  { %v469_v30 = vmul.f32 1.442695, %v466_v29 }
 0x289   :  { %619 = vpow2.f32 %v469_v30 }
 0x292   :  { %v618_v31 = vpop.eup %617 }
 0x293   :  { %v471_v12 = vsel %vm453_vm13, %v618_v31, 0.0 }
 0x294   :  { %473 = vadd.xlane.f32.xlu1 %v471_v12 }
 0x296   :  { %v620_v13 = vpop.eup %619 }
 0x297   :  { %v472_v32 = vsel %vm453_vm13, %v620_v13, 0.0 }
 0x298   :  { %475 = vadd.xlane.f32.xlu1 %v472_v32 }
 0x31d   :  { %v474_v34 = vpop.xlane.xlu1 %473 }
 0x31e   :  { %621 = vrcp.f32 %v474_v34 }
 0x321   :  { %v476_v36 = vpop.xlane.xlu1 %475 }
 0x322   :  { %623 = vrcp.f32 %v476_v36 }
 0x32b   :  { %v622_v37 = vpop.eup %621 }
 0x32c   :  { %v479_v38 = vsel %vm453_vm13, %v622_v37, 1.0 }
 0x32d   :  { %v481_v40 = vmul.f32 %v618_v31, %v479_v38 }
 0x32f   :  { %v624_v39 = vpop.eup %623  ;;  %v485_v43 = vsel %vm454_vm14, %v481_v40, %v445_v15 }
 0x330   :  { %v480_v41 = vsel %vm453_vm13, %v624_v39, 1.0 }
 0x331   :  { %v482_v42 = vmul.f32 %v620_v13, %v480_v41 }
 0x333   :  { %v486_v33 = vsel %vm454_vm14, %v482_v42, %v448_v20 }
 0x334   :  { %v542_v44 = vpack.c.bf16 %v486_v33, %v485_v43 }
 0x336   :  { %543 = vst [vmem:[#allocation5] sm:$0xff] %v542_v44  }
 0x337   :  { %656 = shalt.err (!%p653_p9)
}
 0x338   :  { %508 = dma.vmem_to_hbm [thread:$0]  %s503_s6, 128, %s837_s5, [#allocation4], %s670_s21, %s670_s21, %s671_s22  }
 0x339   :  { %667 = dma.done.wait [#allocation4], 128  }
 0x33a   :  { %668 = vsyncadd [#allocation4], 4294967168 }
 0x33b   :  { %512 = vsyncpa [#allocation3], 1 }
 0x33c   :  { %513 = vsyncpa [#allocation4], 1 }

</bundles_post_ra>
